<compile_context>
chip_gen: v6e
topology: v6e:2x2x1
jax: 0.10.0
libtpu: 0.0.40
codegen_flags: <defaults>
</compile_context>

<pallas_src>
import functools

import jax
import jax.numpy as jnp
from jax.experimental import pallas as pl
from jax.experimental.pallas import tpu as pltpu


def _spatial_softmax_kernel(feat_ref, posx_ref, posy_ref, out_ref, *, inv_temperature):
    # feat_ref: (TR, HW), posx_ref/posy_ref: (1, HW), out_ref: (TR, 2)
    f = feat_ref[...].astype(jnp.float32) * jnp.float32(inv_temperature)
    # Numerically stable softmax over the spatial (lane) axis, without ever
    # materializing the normalized attention map.
    m = jnp.max(f, axis=-1, keepdims=True)          # (TR, 1)
    e = jnp.exp(f - m)                              # (TR, HW)
    denom = jnp.sum(e, axis=-1, keepdims=True)      # (TR, 1)
    sx = jnp.sum(posx_ref[...] * e, axis=-1, keepdims=True)  # (TR, 1)
    sy = jnp.sum(posy_ref[...] * e, axis=-1, keepdims=True)  # (TR, 1)
    # Exact reciprocal on a (TR, 1) column is cheap and keeps tight tolerances.
    inv = pl.reciprocal(denom, approx=False)
    out_ref[:, 0:1] = (sx * inv).astype(out_ref.dtype)
    out_ref[:, 1:2] = (sy * inv).astype(out_ref.dtype)


def _choose_row_tile(rows, hw, itemsize, per_buffer_budget_bytes=4 * 1024 * 1024):
    """Pick a row-tile size: multiple of 8, capped so one buffer stays ~<=4 MiB
    (so two input buffers + f32 intermediates fit comfortably on v7x VMEM)."""
    tr = per_buffer_budget_bytes // max(1, hw * itemsize)
    tr = max(8, min(tr, 1024))
    tr = (tr // 8) * 8
    rows_pad8 = ((rows + 7) // 8) * 8
    return min(tr, rows_pad8)


def extended_spatial_softmax(feature, pos_x, pos_y, temperature=1.0):
    """feature: (N, C, H, W) -> (N*C, 2) float32, cols = [expected_x, expected_y]."""
    N, C, H, W = feature.shape
    R = N * C
    HW = H * W

    # Keep the feature in its native dtype (e.g. bf16) for the HBM->VMEM DMA;
    # the kernel upcasts to f32 for the math.
    feat2d = feature.reshape(R, HW)
    posx2d = pos_x.reshape(1, HW).astype(jnp.float32)
    posy2d = pos_y.reshape(1, HW).astype(jnp.float32)

    itemsize = jnp.dtype(feat2d.dtype).itemsize
    TR = _choose_row_tile(R, HW, itemsize)
    num_tiles = -(-R // TR)
    R_pad = num_tiles * TR
    if R_pad != R:
        # Zero-padded rows produce a uniform softmax (no NaNs); they are
        # sliced off from the output below.
        feat2d = jnp.pad(feat2d, ((0, R_pad - R), (0, 0)))

    kernel = functools.partial(
        _spatial_softmax_kernel, inv_temperature=1.0 / float(temperature)
    )
    # TODO(synk): if temperature is a learned parameter (traced value), pass it
    # via an SMEM scalar instead of baking the static inverse into the kernel.

    cost = pl.CostEstimate(
        flops=6 * R_pad * HW,
        transcendentals=R_pad * HW,
        bytes_accessed=R_pad * HW * itemsize + 2 * HW * 4 + R_pad * 2 * 4,
    )

    out = pl.pallas_call(
        kernel,
        out_shape=jax.ShapeDtypeStruct((R_pad, 2), jnp.float32),
        grid=(num_tiles,),
        in_specs=[
            pl.BlockSpec((TR, HW), lambda i: (i, 0)),
            pl.BlockSpec((1, HW), lambda i: (0, 0)),
            pl.BlockSpec((1, HW), lambda i: (0, 0)),
        ],
        out_specs=pl.BlockSpec((TR, 2), lambda i: (i, 0)),
        compiler_params=pltpu.CompilerParams(
            dimension_semantics=("parallel",),
            vmem_limit_bytes=48 * 1024 * 1024,
        ),
        cost_estimate=cost,
    )(feat2d, posx2d, posy2d)

    return out[:R]


def make_position_buffers(height, width):
    """Reproduces np.meshgrid(linspace(-1,1,H), linspace(-1,1,W)) flattened to
    length H*W, as in the module's __init__ (xy indexing -> shape (W, H)).
    Note: for H != W this flattening order is transposed relative to the
    h-major feature flattening — this mirrors the original module's behavior."""
    lin_h = jnp.linspace(-1.0, 1.0, height)
    lin_w = jnp.linspace(-1.0, 1.0, width)
    pos_x, pos_y = jnp.meshgrid(lin_h, lin_w, indexing="xy")  # each (W, H)
    pos_x = pos_x.reshape(height * width).astype(jnp.float32)
    pos_y = pos_y.reshape(height * width).astype(jnp.float32)
    # TODO(synk): homo_x/homo_y/homo_z buffers are registered in __init__ but
    # never used in forward (and homo_z construction is buggy in the source),
    # so they are omitted here.
    return pos_x, pos_y


if __name__ == "__main__":
    # Small shapes consistent with the module: batch=2, channels=4, 16x16 maps.
    N, C, H, W = 2, 4, 16, 16
    key = jax.random.PRNGKey(0)
    feature = jax.random.normal(key, (N, C, H, W), dtype=jnp.float32)

    pos_x, pos_y = make_position_buffers(H, W)

    out = extended_spatial_softmax(feature, pos_x, pos_y, temperature=1.0)
    out = jax.block_until_ready(out)

    # Sanity check against a pure-JAX reference.
    feat2d = feature.reshape(N * C, H * W)
    attn = jax.nn.softmax(feat2d / 1.0, axis=-1)
    ref_x = jnp.sum(pos_x[None, :] * attn, axis=1, keepdims=True)
    ref_y = jnp.sum(pos_y[None, :] * attn, axis=1, keepdims=True)
    ref = jnp.concatenate([ref_x, ref_y], axis=1)
    assert out.shape == (N * C, 2)
    assert jnp.allclose(out, ref, atol=1e-5, rtol=1e-5)

    print("KERNEL_OK")
</pallas_src>

<mosaic_0001>
module attributes {stable_mosaic.version = 11 : i64} {
  func.func @_spatial_softmax_kernel(%arg0: i32, %arg1: memref<8x256xf32, #tpu.memory_space<vmem>>, %arg2: memref<1x256xf32, #tpu.memory_space<vmem>>, %arg3: memref<1x256xf32, #tpu.memory_space<vmem>>, %arg4: memref<8x2xf32, #tpu.memory_space<vmem>>) attributes {dimension_semantics = [#tpu.dimension_semantics<parallel>], iteration_bounds = array<i64: 1>, scalar_prefetch = 0 : i64, scratch_operands = 0 : i64, tpu.core_type = #tpu.core_type<tc>, window_params = [{transform_indices = @transform_0, window_bounds = array<i64: 8, 256>}, {pipeline_mode = #tpu.pipeline_mode<synchronous>, transform_indices = @transform_1, window_bounds = array<i64: 1, 256>}, {pipeline_mode = #tpu.pipeline_mode<synchronous>, transform_indices = @transform_2, window_bounds = array<i64: 1, 256>}, {transform_indices = @transform_3, window_bounds = array<i64: 8, 2>}]} {
    %c0 = arith.constant 0 : index
    %c0_0 = arith.constant 0 : index
    %0 = vector.load %arg1[%c0, %c0_0] : memref<8x256xf32, #tpu.memory_space<vmem>>, vector<8x256xf32>
    %cst = arith.constant 1.000000e+00 : f32
    %1 = vector.broadcast %cst : f32 to vector<8x256xf32>
    %2 = arith.mulf %0, %1 : vector<8x256xf32>
    %cst_1 = arith.constant dense<0xFF800000> : vector<8xf32>
    %3 = vector.multi_reduction <maximumf>, %2, %cst_1 [1] : vector<8x256xf32> to vector<8xf32>
    %4 = vector.shape_cast %3 : vector<8xf32> to vector<8x1xf32>
    %5 = vector.broadcast %4 : vector<8x1xf32> to vector<8x256xf32>
    %6 = arith.subf %2, %5 : vector<8x256xf32>
    %7 = math.exp %6 : vector<8x256xf32>
    %cst_2 = arith.constant dense<0.000000e+00> : vector<8xf32>
    %8 = vector.multi_reduction <add>, %7, %cst_2 [1] : vector<8x256xf32> to vector<8xf32>
    %9 = vector.shape_cast %8 : vector<8xf32> to vector<8x1xf32>
    %c0_3 = arith.constant 0 : index
    %c0_4 = arith.constant 0 : index
    %10 = vector.load %arg2[%c0_3, %c0_4] : memref<1x256xf32, #tpu.memory_space<vmem>>, vector<1x256xf32>
    %11 = vector.broadcast %10 : vector<1x256xf32> to vector<8x256xf32>
    %12 = arith.mulf %11, %7 : vector<8x256xf32>
    %cst_5 = arith.constant dense<0.000000e+00> : vector<8xf32>
    %13 = vector.multi_reduction <add>, %12, %cst_5 [1] : vector<8x256xf32> to vector<8xf32>
    %14 = vector.shape_cast %13 : vector<8xf32> to vector<8x1xf32>
    %c0_6 = arith.constant 0 : index
    %c0_7 = arith.constant 0 : index
    %15 = vector.load %arg3[%c0_6, %c0_7] : memref<1x256xf32, #tpu.memory_space<vmem>>, vector<1x256xf32>
    %16 = vector.broadcast %15 : vector<1x256xf32> to vector<8x256xf32>
    %17 = arith.mulf %16, %7 : vector<8x256xf32>
    %cst_8 = arith.constant dense<0.000000e+00> : vector<8xf32>
    %18 = vector.multi_reduction <add>, %17, %cst_8 [1] : vector<8x256xf32> to vector<8xf32>
    %19 = vector.shape_cast %18 : vector<8xf32> to vector<8x1xf32>
    %20 = tpu.reciprocal %9 : vector<8x1xf32> -> vector<8x1xf32>
    %21 = arith.mulf %14, %20 : vector<8x1xf32>
    %c0_9 = arith.constant 0 : index
    %c0_10 = arith.constant 0 : index
    %22 = vector.load %arg4[%c0_9, %c0_10] : memref<8x2xf32, #tpu.memory_space<vmem>>, vector<8x1xf32>
    tpu.vector_store %arg4[%c0_9, %c0_10], %21 {strides = array<i32>} : memref<8x2xf32, #tpu.memory_space<vmem>>, vector<8x1xf32>,
    %23 = arith.mulf %19, %20 : vector<8x1xf32>
    %c0_11 = arith.constant 0 : index
    %c1 = arith.constant 1 : index
    %24 = vector.load %arg4[%c0_11, %c1] : memref<8x2xf32, #tpu.memory_space<vmem>>, vector<8x1xf32>
    tpu.vector_store %arg4[%c0_11, %c1], %23 {strides = array<i32>} : memref<8x2xf32, #tpu.memory_space<vmem>>, vector<8x1xf32>,
    return
  }
  func.func @transform_0(%arg0: i32) -> (i32, i32) {
    %c0_i32 = arith.constant 0 : i32
    %c0_i32_0 = arith.constant 0 : i32
    return %arg0, %c0_i32 : i32, i32
  }
  func.func @transform_1(%arg0: i32) -> (i32, i32) {
    %c0_i32 = arith.constant 0 : i32
    %c0_i32_0 = arith.constant 0 : i32
    %c0_i32_1 = arith.constant 0 : i32
    return %c0_i32, %c0_i32_0 : i32, i32
  }
  func.func @transform_2(%arg0: i32) -> (i32, i32) {
    %c0_i32 = arith.constant 0 : i32
    %c0_i32_0 = arith.constant 0 : i32
    %c0_i32_1 = arith.constant 0 : i32
    return %c0_i32, %c0_i32_0 : i32, i32
  }
  func.func @transform_3(%arg0: i32) -> (i32, i32) {
    %c0_i32 = arith.constant 0 : i32
    %c0_i32_0 = arith.constant 0 : i32
    return %arg0, %c0_i32 : i32, i32
  }
}

</mosaic_0001>

<bundles_post_ra>
// kernel: tpu_custom_call.1
= control target key start
LH: loop header
LB: loop body
LE: loop exit
PB: predicated region body
PF: predicated region fallthrough
CT: control target
= control target key end

     0   :  { %8 = vsyncpa [#allocation3], 0  ;;  %s188_s0 = inlined_call_operand.hbm [shape: f32[8,256], index: 0, kind: input, shape index: {}]   ;;  %s189_s1 = inlined_call_operand.hbm [shape: f32[1,256], index: 1, kind: input, shape index: {}]   ;;  %s190_s2 = inlined_call_operand.vmem [shape: f32[1,256], index: 2, kind: input, shape index: {}]   ;;  %s191_s3 = inlined_call_operand.vmem [shape: f32[8,2], index: 3, kind: output, shape index: {}]  }
   0x1   :  { %9 = vsyncpa [#allocation5], 0  ;;  %s151_s12 = smov [#allocation2]   ;;  %s152_s14 = smov [#allocation4]  }
   0x2   :  { %s16_s13 = sshll.u32 %s151_s12, 4  ;;  %s26_s15 = sshll.u32 %s152_s14, 4  ;;  %s17_s13 = int_to_ptr.vmem [resolvable:$true] %s16_s13  ;;  %s27_s15 = int_to_ptr.vmem [resolvable:$true] %s26_s15 }
   0x3   :  { %s115_s16 = scalar_lea.vmem %s17_s13, 256  ;;  %p120_p1 = scmp.lt.s32.totalorder %s17_s13, %s17_s13 }
   0x4   :  { %p116_p0 = scmp.ne.s32.totalorder %s17_s13, %s115_s16  ;;  %p121_p2 = scmp.lt.s32.totalorder %s115_s16, %s115_s16 }
   0x6   :  { %p122_p3 = por %p121_p2, %p120_p1 }
   0x8   :  { %p123_p4 = pnand %p122_p3, %p116_p0 }
   0xa   :  { %126 = shalt.err (!%p123_p4)
}
   0xb   :  { %19 = dma.hbm_to_vmem [thread:$0]  %s188_s0, 256, %s17_s13, [#allocation3]  }
   0xc   :  { %s135_s19 = scalar_lea.vmem %s27_s15, 32  ;;  %p140_p6 = scmp.lt.s32.totalorder %s27_s15, %s27_s15 }
   0xd   :  { %p136_p5 = scmp.ne.s32.totalorder %s27_s15, %s135_s19  ;;  %p141_p7 = scmp.lt.s32.totalorder %s135_s19, %s135_s19 }
   0xf   :  { %p142_p8 = por %p141_p7, %p140_p6 }
  0x11   :  { %p143_p9 = pnand %p142_p8, %p136_p5 }
  0x13   :  { %146 = shalt.err (!%p143_p9)
}
  0x14   :  { %29 = dma.hbm_to_vmem [thread:$0]  %s189_s1, 32, %s27_s15, [#allocation5]  }
  0x15   :  { %147 = dma.done.wait [#allocation3], 256  }
  0x16   :  { %148 = vsyncadd [#allocation3], 4294967040 }
  0x17   :  { %149 = dma.done.wait [#allocation5], 32  }
  0x18   :  { %150 = vsyncadd [#allocation5], 4294967264  ;;  %v38_v0 = vld [vmem:[#allocation2] sm:$0xff]  ;;  %v39_v1 = vld [vmem:[#allocation2 + $0x8] sm:$0xff]  ;;  %v54_v8 = vlaneseq  ;;  %vm88_vm0 = vcmask 7168   ;;  %vm91_vm1 = vcmask 15368  }
  0x19   :  { %v40_v2 = vmax.f32 %v38_v0, %v39_v1  ;;  %v52_v11 = vld [vmem:[#allocation4] sm:$0x3]  ;;  %v69_v14 = vld [vmem:[%s190_s2] sm:$0x3] }
  0x1a   :  { %v55_v9 = vshrl.u32 %v54_v8, 7 }
  0x1b   :  { %41 = vmax.xlane.f32.xlu0 %v40_v2 }
  0x1c   :  { %v56_v10 = vsub.s32 0, %v55_v9  ;;  %v60_v12 = vsub.s32 1, %v55_v9 }
  0x1e   :  { %v57_v13 = vrot.slane %v52_v11, %v56_v10  ;;  %v61_v15 = vrot.slane %v52_v11, %v60_v12  ;;  %v74_v17 = vrot.slane %v69_v14, %v56_v10  ;;  %v78_v18 = vrot.slane %v69_v14, %v60_v12 }
  0xa4   :  { %v42_v3 = vpop.xlane.xlu0 %41 }
  0xa5   :  { %v43_v4 = vsub.f32 %v38_v0, %v42_v3  ;;  %v44_v5 = vsub.f32 %v39_v1, %v42_v3 }
  0xa7   :  { %v45_v6 = vmul.f32 1.442695, %v43_v4  ;;  %v47_v7 = vmul.f32 1.442695, %v44_v5 }
  0xa9   :  { %101 = vpow2.f32 %v45_v6 }
  0xaa   :  { %103 = vpow2.f32 %v47_v7 }
  0xb6   :  { %v102_v16 = vpop.eup %101 }
  0xb7   :  { %v104_v19 = vpop.eup %103  ;;  %v64_v20 = vmul.f32 %v102_v16, %v57_v13  ;;  %v81_v24 = vmul.f32 %v102_v16, %v74_v17 }
  0xb8   :  { %v49_v21 = vadd.f32 %v104_v19, %v102_v16  ;;  %v65_v22 = vmul.f32 %v104_v19, %v61_v15  ;;  %v82_v25 = vmul.f32 %v104_v19, %v78_v18 }
  0xba   :  { %50 = vadd.xlane.f32.xlu0 %v49_v21  ;;  %v66_v23 = vadd.f32 %v65_v22, %v64_v20  ;;  %v83_v26 = vadd.f32 %v82_v25, %v81_v24 }
  0xbc   :  { %67 = vadd.xlane.f32.xlu1 %v66_v23 }
  0xc0   :  { %84 = vadd.xlane.f32.xlu1 %v83_v26 }
 0x143   :  { %v51_v27 = vpop.xlane.xlu0 %50 }
 0x144   :  { %105 = vrcp.f32 %v51_v27 }
 0x145   :  { %v68_v28 = vpop.xlane.xlu1 %67 }
 0x149   :  { %v85_v30 = vpop.xlane.xlu1 %84 }
 0x151   :  { %v106_v29 = vpop.eup %105 }
 0x152   :  { %v87_v31 = vmul.f32 %v106_v29, %v68_v28  ;;  %v90_v32 = vmul.f32 %v106_v29, %v85_v30 }
 0x154   :  { %89 = vst.msk [vmem:[%s191_s3] sm:$0xff] %vm88_vm0, %v87_v31 }
 0x155   :  { %92 = vst.msk [vmem:[%s191_s3] sm:$0xff] %vm91_vm1, %v90_v32 }
 0x156   :  { %97 = vsyncpa [#allocation3], 1 }
 0x157   :  { %98 = vsyncpa [#allocation5], 1 }

</bundles_post_ra>
